<compile_context>
chip_gen: v7x
topology: tpu7x:2x2x1
jax: 0.10.0
libtpu: 0.0.40
codegen_flags: <defaults>
</compile_context>

<pallas_src>
import jax
import jax.numpy as jnp
from jax.experimental import pallas as pl
from jax.experimental.pallas import tpu as pltpu


def _linear_kernel(x_ref, p_ref, o_ref):
    # x: (Bt, K=3)   p: (K+1, N=4) = [W^T ; b]   o: (Bt, N=4)
    x = x_ref[...]
    K = x.shape[1]
    w = p_ref[:K, :]          # (K, N)  static slice -> free
    b = p_ref[K:K + 1, :]     # (1, N)  static slice -> free
    acc = b                   # bias as accumulator init, broadcasts over rows
    for k in range(K):        # K = 3, unrolled at trace time (VPU FMAs, no MXU)
        acc = acc + x[:, k:k + 1] * w[k:k + 1, :]
    o_ref[...] = acc.astype(o_ref.dtype)


def testnet_forward(x, weight, bias):
    """x: (B, 3); weight: (4, 3) (PyTorch layout); bias: (4,) -> (B, 4) f32."""
    B, K = x.shape
    N = weight.shape[0]

    # Pack [W^T ; b] into a single (K+1, N) operand (one DMA instead of two).
    params = jnp.concatenate(
        [weight.T.astype(jnp.float32), bias.reshape(1, N).astype(jnp.float32)],
        axis=0,
    )
    x = x.astype(jnp.float32)

    cost = pl.CostEstimate(
        flops=2 * B * K * N,
        transcendentals=0,
        bytes_accessed=4 * (B * K + (K + 1) * N + B * N),
    )

    # Large-B path: 1-D batch grid so VMEM stays bounded and (on v7x) the two
    # TensorCores split the batch.  Not exercised at the test size (B=8).
    if B >= 512 and B % 8 == 0:
        bt = min(B, 4096)
        while B % bt:          # largest multiple of 8 that divides B
            bt -= 8
        return pl.pallas_call(
            _linear_kernel,
            out_shape=jax.ShapeDtypeStruct((B, N), jnp.float32),
            grid=(B // bt,),
            in_specs=[
                pl.BlockSpec((bt, K), lambda i: (i, 0)),
                pl.BlockSpec((K + 1, N), lambda i: (0, 0)),
            ],
            out_specs=pl.BlockSpec((bt, N), lambda i: (i, 0)),
            compiler_params=pltpu.CompilerParams(
                dimension_semantics=("parallel",)),
            cost_estimate=cost,
        )(x, params)

    # Small-B path: gridless, full-array blocks (block == array, so no
    # (8,128) divisibility requirement), true (B, 4) output written directly.
    return pl.pallas_call(
        _linear_kernel,
        out_shape=jax.ShapeDtypeStruct((B, N), jnp.float32),
        in_specs=[
            pl.BlockSpec(memory_space=pltpu.MemorySpace.VMEM),
            pl.BlockSpec(memory_space=pltpu.MemorySpace.VMEM),
        ],
        out_specs=pl.BlockSpec(memory_space=pltpu.MemorySpace.VMEM),
        cost_estimate=cost,
    )(x, params)


def init_params(key):
    """Deterministic init matching nn.Linear(3, 4) shapes (uniform +/- 1/sqrt(in))."""
    in_f, out_f = 3, 4
    k_w, k_b = jax.random.split(key)
    bound = 1.0 / jnp.sqrt(in_f)
    weight = jax.random.uniform(k_w, (out_f, in_f), jnp.float32, -bound, bound)
    bias = jax.random.uniform(k_b, (out_f,), jnp.float32, -bound, bound)
    return weight, bias


if __name__ == "__main__":
    key = jax.random.PRNGKey(0)
    k_params, k_x = jax.random.split(key)

    weight, bias = init_params(k_params)
    x = jax.random.normal(k_x, (8, 3), jnp.float32)  # batch=8, in_features=3

    y = testnet_forward(x, weight, bias)
    jax.block_until_ready(y)

    # Sanity-check against plain JAX reference.
    y_ref = x @ weight.T + bias
    assert y.shape == (8, 4)
    assert jnp.allclose(y, y_ref, atol=1e-5), "mismatch vs reference"

    print("KERNEL_OK")
</pallas_src>

<mosaic_0001>
module attributes {stable_mosaic.version = 11 : i64} {
  func.func @_linear_kernel(%arg0: memref<8x3xf32, #tpu.memory_space<vmem>>, %arg1: memref<4x4xf32, #tpu.memory_space<vmem>>, %arg2: memref<8x4xf32, #tpu.memory_space<vmem>>) attributes {dimension_semantics = [], scalar_prefetch = 0 : i64, scratch_operands = 0 : i64, tpu.core_type = #tpu.core_type<tc>} {
    %c0 = arith.constant 0 : index
    %c0_0 = arith.constant 0 : index
    %0 = vector.load %arg0[%c0, %c0_0] : memref<8x3xf32, #tpu.memory_space<vmem>>, vector<8x3xf32>
    %c0_1 = arith.constant 0 : index
    %c0_2 = arith.constant 0 : index
    %1 = vector.load %arg1[%c0_1, %c0_2] : memref<4x4xf32, #tpu.memory_space<vmem>>, vector<3x4xf32>
    %c3 = arith.constant 3 : index
    %c0_3 = arith.constant 0 : index
    %2 = vector.load %arg1[%c3, %c0_3] : memref<4x4xf32, #tpu.memory_space<vmem>>, vector<1x4xf32>
    %3 = vector.extract_strided_slice %0 {offsets = [0, 0], sizes = [8, 1], strides = [1, 1]} : vector<8x3xf32> to vector<8x1xf32>
    %4 = vector.extract_strided_slice %1 {offsets = [0, 0], sizes = [1, 4], strides = [1, 1]} : vector<3x4xf32> to vector<1x4xf32>
    %5 = vector.broadcast %3 : vector<8x1xf32> to vector<8x4xf32>
    %6 = vector.broadcast %4 : vector<1x4xf32> to vector<8x4xf32>
    %7 = arith.mulf %5, %6 : vector<8x4xf32>
    %8 = vector.broadcast %2 : vector<1x4xf32> to vector<8x4xf32>
    %9 = arith.addf %8, %7 : vector<8x4xf32>
    %10 = vector.extract_strided_slice %0 {offsets = [0, 1], sizes = [8, 1], strides = [1, 1]} : vector<8x3xf32> to vector<8x1xf32>
    %11 = vector.extract_strided_slice %1 {offsets = [1, 0], sizes = [1, 4], strides = [1, 1]} : vector<3x4xf32> to vector<1x4xf32>
    %12 = vector.broadcast %10 : vector<8x1xf32> to vector<8x4xf32>
    %13 = vector.broadcast %11 : vector<1x4xf32> to vector<8x4xf32>
    %14 = arith.mulf %12, %13 : vector<8x4xf32>
    %15 = arith.addf %9, %14 : vector<8x4xf32>
    %16 = vector.extract_strided_slice %0 {offsets = [0, 2], sizes = [8, 1], strides = [1, 1]} : vector<8x3xf32> to vector<8x1xf32>
    %17 = vector.extract_strided_slice %1 {offsets = [2, 0], sizes = [1, 4], strides = [1, 1]} : vector<3x4xf32> to vector<1x4xf32>
    %18 = vector.broadcast %16 : vector<8x1xf32> to vector<8x4xf32>
    %19 = vector.broadcast %17 : vector<1x4xf32> to vector<8x4xf32>
    %20 = arith.mulf %18, %19 : vector<8x4xf32>
    %21 = arith.addf %15, %20 : vector<8x4xf32>
    %c0_4 = arith.constant 0 : index
    %c0_5 = arith.constant 0 : index
    %22 = vector.load %arg2[%c0_4, %c0_5] : memref<8x4xf32, #tpu.memory_space<vmem>>, vector<8x4xf32>
    tpu.vector_store %arg2[%c0_4, %c0_5], %21 {strides = array<i32>} : memref<8x4xf32, #tpu.memory_space<vmem>>, vector<8x4xf32>,
    return
  }
}

</mosaic_0001>

<bundles_post_ra>
// kernel: tpu_custom_call.1
= control target key start
LH: loop header
LB: loop body
LE: loop exit
PB: predicated region body
PF: predicated region fallthrough
CT: control target
= control target key end

     0   :  { %v63_v0 = vmov 0   ;;  %v64_v2 = vmov 2   ;;  %v65_v3 = vmov 1   ;;  %v19_v4 = vlaneseq  ;;  %s93_s0 = inlined_call_operand.vmem [shape: f32[8,3], index: 0, kind: input, shape index: {}]   ;;  %s94_s1 = inlined_call_operand.vmem [shape: f32[4,4], index: 1, kind: input, shape index: {}]   ;;  %s95_s2 = inlined_call_operand.vmem [shape: f32[8,4], index: 2, kind: output, shape index: {}]  }
   0x1   :  { %59 = vset.pattern.permute.xlu0 %v63_v0  ;;  %v11_v1 = vld [vmem:[%s93_s0] sm:$0xff]  ;;  %61 = vset.pattern.permute.xlu1 %v64_v2  ;;  %vm49_vm0 = vcmask 31744  }
   0x2   :  { %16 = vperm.xlu0 %59, %v11_v1   ;;  %40 = vperm.xlu1 %61, %v11_v1   ;;  %v20_v5 = vshrl.u32 %v19_v4, 7  ;;  %v12_v7 = vld [vmem:[%s94_s1] sm:$0x7]  ;;  %v55_v15 = vld [vmem:[%s94_s1 + $0x3] ss:$0 sm:$0xff] }
   0x4   :  { %v21_v6 = vsub.s32 0, %v20_v5  ;;  %v35_v9 = vsub.s32 1, %v20_v5  ;;  %v45_v10 = vsub.s32 2, %v20_v5 }
   0x6   :  { %60 = vset.pattern.permute.xlu0 %v65_v3  ;;  %v22_v8 = vrot.slane %v12_v7, %v21_v6  ;;  %v36_v13 = vrot.slane %v12_v7, %v35_v9  ;;  %v46_v14 = vrot.slane %v12_v7, %v45_v10 }
   0x7   :  { %30 = vperm.xlu0 %60, %v11_v1  }
   0xb   :  { %62 = vset.pattern.permute.xlu0 %v64_v2 }
  0x81   :  { %v17_v11 = vpop.permute.xlu0 %16  ;;  %v41_v16 = vpop.permute.xlu1 %40 }
  0x82   :  { %v23_v12 = vmul.f32 %v22_v8, %v17_v11  ;;  %v47_v20 = vmul.f32 %v46_v14, %v41_v16 }
  0x84   :  { %v28_v18 = vadd.f32 %v55_v15, %v23_v12 }
  0x86   :  { %v31_v17 = vpop.permute.xlu0 %30 }
  0x87   :  { %v37_v19 = vmul.f32 %v36_v13, %v31_v17 }
  0x89   :  { %v38_v21 = vadd.f32 %v37_v19, %v28_v18 }
  0x8b   :  { %v48_v22 = vadd.f32 %v47_v20, %v38_v21 }
  0x8d   :  { %50 = vst.msk [vmem:[%s95_s2] sm:$0xff] %vm49_vm0, %v48_v22 }

</bundles_post_ra>
